<compile_context>
chip_gen: v6e
topology: v6e:2x2x1
jax: 0.10.0
libtpu: 0.0.40
codegen_flags: <defaults>
</compile_context>

<pallas_src>
import numpy as np
import jax
import jax.numpy as jnp
from jax.experimental import pallas as pl
from jax.experimental.pallas import tpu as pltpu


# ----------------------------------------------------------------------------
# Fused forward kernel (single grid axis over the batch, marked "parallel").
# ----------------------------------------------------------------------------
def _policy_fwd_kernel(x_ref, w1_ref, w2_ref, w3_ref, wf_ref, wh_ref,
                       b1_ref, b2_ref, b3_ref, bf_ref, bh_ref,
                       act_ref, mean_ref, q_ref):
    f32 = jnp.float32
    cdt = x_ref.dtype                        # storage / MXU dtype (f32 or bf16)
    OUT = wh_ref.shape[1]

    x = x_ref[...]                           # (tb, H*W*3), lane-dense

    # ---- conv1 (3->16, 2x2 valid) + ReLU + MaxPool2d(2,2):
    # 4 pool-candidate dots + elementwise max + one bias/ReLU epilogue.
    m = jnp.dot(x, w1_ref[0], preferred_element_type=f32)        # (tb, Hp*Wp*16)
    for k in range(1, 4):
        m = jnp.maximum(m, jnp.dot(x, w1_ref[k], preferred_element_type=f32))
    p1 = jnp.maximum(m + b1_ref[...], 0.0).astype(cdt)           # (tb, 144)

    # ---- conv2 (16->32, 2x2) + ReLU: one block-diagonal dot -> flattened h2.
    h2 = jnp.maximum(
        jnp.dot(p1, w2_ref[...], preferred_element_type=f32) + b2_ref[...], 0.0
    ).astype(cdt)                                                # (tb, 128)

    # ---- conv3 (32->64, 2x2) + ReLU: 1x1 spatial output, so Flatten() is the
    # identity and the 64-lane result feeds nn.Linear(64, hidden) directly.
    h3 = jnp.maximum(
        jnp.dot(h2, w3_ref[...], preferred_element_type=f32) + b3_ref[...], 0.0
    ).astype(cdt)                                                # (tb, 64)

    # ---- fc1 + ReLU
    f = jnp.maximum(
        jnp.dot(h3, wf_ref[...], preferred_element_type=f32) + bf_ref[...], 0.0
    ).astype(cdt)                                                # (tb, HID)

    # ---- task head (task_idx = 0) -> q values
    q = jnp.dot(f, wh_ref[...], preferred_element_type=f32) + bh_ref[...]
    q_ref[...] = q                                               # (tb, OUT) f32

    # ---- Policy.forward epilogue: mean = softmax(q, dim=1); action = argmax.
    qmax = jnp.max(q, axis=-1, keepdims=True)
    e = jnp.exp(q - qmax)
    denom = jnp.sum(e, axis=-1, keepdims=True)
    r = pl.reciprocal(denom, approx=True)        # EUP slot (free-ish)
    r = r * (2.0 - denom * r)                    # one Newton step -> ~f32 exact
    mean_ref[...] = e * r
    ids = jax.lax.broadcasted_iota(jnp.int32, q.shape, 1).astype(f32)
    first_max = jnp.min(jnp.where(q >= qmax, ids, float(OUT)),
                        axis=-1, keepdims=True)
    act_ref[...] = first_max.astype(jnp.int32)


# ----------------------------------------------------------------------------
# Wrapper: lane-dense input, scatter/block-diagonal weight construction,
# batch-tiled grid, one pallas_call.
# ----------------------------------------------------------------------------
def _conv1_pool_selector(H, W, Hp, Wp):
    # S[k, h_in, w_in, oh, ow, dy, dx] = 1  iff  h_in == 2*oh + ph + dy and
    # w_in == 2*ow + pw + dx, with k = ph*2 + pw (pool candidate index).
    S = np.zeros((4, H, W, Hp, Wp, 2, 2), np.float32)
    for ph in range(2):
        for pw in range(2):
            k = ph * 2 + pw
            for oh in range(Hp):
                for ow in range(Wp):
                    for dy in range(2):
                        for dx in range(2):
                            S[k, 2 * oh + ph + dy, 2 * ow + pw + dx,
                              oh, ow, dy, dx] = 1.0
    return S


def _conv2_selector(Hp, Wp, H2, W2):
    # S[h_in, w_in, yh, yw, dy, dx] = 1  iff  h_in == yh + dy and w_in == yw + dx.
    S = np.zeros((Hp, Wp, H2, W2, 2, 2), np.float32)
    for yh in range(H2):
        for yw in range(W2):
            for dy in range(2):
                for dx in range(2):
                    S[yh + dy, yw + dx, yh, yw, dy, dx] = 1.0
    return S


def _pick_batch_tile(B):
    # Largest MXU-friendly tile dividing B that still gives grid >= 2
    # (double-buffered input DMA; both v7x TensorCores used). Falls back to B.
    for tb in (256, 128, 64, 32, 16, 8):
        if B % tb == 0 and B // tb >= 2:
            return tb
    return B


def _policy_forward_impl(x, params, dtype=jnp.bfloat16, batch_tile=None):
    """x: (B, H, W, 3) NHWC -> (action (B,1) i32, mean (B,out) f32, q (B,out) f32).

    Policy.forward(..., argmax=True) returns (action, mean, logvar=None); q is
    also returned here for testing.  `dtype` is the storage/MXU dtype for
    weights and activations (accumulation is always f32)."""
    B, H, W, C0 = x.shape
    C1 = params["conv1_w"].shape[-1]      # 16
    C2 = params["conv2_w"].shape[-1]      # 32
    C3 = params["conv3_w"].shape[-1]      # 64
    HID = params["fc1_w"].shape[-1]
    OUT = params["head_w"].shape[-1]
    Hp, Wp = (H - 1) // 2, (W - 1) // 2   # pooled conv1 output
    H2, W2 = Hp - 1, Wp - 1               # conv2 output
    # nn.Linear(64, hidden) in the PyTorch module requires conv3 output == 1x1.
    assert H2 - 1 == 1 and W2 - 1 == 1, \
        "input_dim must give a 1x1 conv3 output (e.g. 7x7 or 8x8)"
    assert params["fc1_w"].shape[0] == C3

    tb = _pick_batch_tile(B) if batch_tile is None else batch_tile
    assert B % tb == 0 and (tb == B or tb % 8 == 0)
    grid = (B // tb,)

    KX = H * W * C0          # 147 for 7x7x3
    K1 = Hp * Wp * C1        # 144
    K2 = H2 * W2 * C2        # 128

    # Lane-dense input; wrapper-built scatter / block-diagonal weights.
    # (Conv weights are HWIO; a PyTorch OIHW conv weight maps via
    #  transpose(2,3,1,0); linear weights are (in,out) = PyTorch weight.T.)
    xc = x.reshape(B, KX).astype(dtype)
    w1, w2, w3 = params["conv1_w"], params["conv2_w"], params["conv3_w"]
    S1 = _conv1_pool_selector(H, W, Hp, Wp)
    S2 = _conv2_selector(Hp, Wp, H2, W2)
    # conv1 pool-candidate weights: (4, H*W*3, Hp*Wp*16)
    w1c = jnp.einsum("khwopyx,yxic->khwiopc", S1, w1).reshape(4, KX, K1).astype(dtype)
    # conv2 block-diagonal weight: (Hp*Wp*16, H2*W2*32)
    w2b = jnp.einsum("hwuvyx,yxic->hwiuvc", S2, w2).reshape(K1, K2).astype(dtype)
    # conv3: (dy,dx,c2) flatten order matches the h2 lane layout -> plain reshape.
    w3b = w3.reshape(K2, C3).astype(dtype)
    wf = params["fc1_w"].astype(dtype)
    wh = params["head_w"].astype(dtype)

    # Pre-tiled, lane-dense f32 bias rows (one broadcast add per layer).
    b1t = jnp.tile(params["conv1_b"], Hp * Wp).astype(jnp.float32)[None, :]
    b2t = jnp.tile(params["conv2_b"], H2 * W2).astype(jnp.float32)[None, :]
    b3r = params["conv3_b"].astype(jnp.float32)[None, :]
    bfr = params["fc1_b"].astype(jnp.float32)[None, :]
    bhr = params["head_b"].astype(jnp.float32)[None, :]

    def full(a):
        nd = a.ndim
        return pl.BlockSpec(tuple(a.shape), lambda i, _nd=nd: (0,) * _nd)

    in_specs = [
        pl.BlockSpec((tb, KX), lambda i: (i, 0)),
        full(w1c), full(w2b), full(w3b), full(wf), full(wh),
        full(b1t), full(b2t), full(b3r), full(bfr), full(bhr),
    ]
    out_shape = (
        jax.ShapeDtypeStruct((B, 1), jnp.int32),       # action (argmax)
        jax.ShapeDtypeStruct((B, OUT), jnp.float32),   # mean = softmax(q)
        jax.ShapeDtypeStruct((B, OUT), jnp.float32),   # q values (pre-softmax)
    )
    out_specs = (
        pl.BlockSpec((tb, 1), lambda i: (i, 0)),
        pl.BlockSpec((tb, OUT), lambda i: (i, 0)),
        pl.BlockSpec((tb, OUT), lambda i: (i, 0)),
    )

    flops_per_sample = 2 * (4 * KX * K1 + K1 * K2 + K2 * C3 + C3 * HID + HID * OUT)
    bytes_accessed = (xc.size * xc.dtype.itemsize
                      + sum(int(a.size) * a.dtype.itemsize
                            for a in (w1c, w2b, w3b, wf, wh,
                                      b1t, b2t, b3r, bfr, bhr))
                      + B * (4 + 2 * OUT * 4))
    cost = pl.CostEstimate(flops=int(B * flops_per_sample),
                           transcendentals=int(B * OUT),
                           bytes_accessed=int(bytes_accessed))

    action, mean, q = pl.pallas_call(
        _policy_fwd_kernel,
        out_shape=out_shape,
        grid_spec=pltpu.PrefetchScalarGridSpec(
            num_scalar_prefetch=0,
            grid=grid,
            in_specs=in_specs,
            out_specs=out_specs),
        compiler_params=pltpu.CompilerParams(
            dimension_semantics=("parallel",),
            vmem_limit_bytes=32 * 1024 * 1024),
        cost_estimate=cost,
    )(xc, w1c, w2b, w3b, wf, wh, b1t, b2t, b3r, bfr, bhr)
    return action, mean, q


policy_forward = jax.jit(_policy_forward_impl, static_argnames=("dtype", "batch_tile"))


# ----------------------------------------------------------------------------
# Deterministic synthetic parameters (PyTorch default-init bounds; conv HWIO,
# linear (in,out)).
# ----------------------------------------------------------------------------
def init_params(key, hidden_size=32, output_dim=4):
    ks = jax.random.split(key, 10)

    def uni(k, shape, fan_in):
        bound = 1.0 / jnp.sqrt(jnp.float32(fan_in))
        return jax.random.uniform(k, shape, jnp.float32, -bound, bound)

    return {
        "conv1_w": uni(ks[0], (2, 2, 3, 16), 2 * 2 * 3),
        "conv1_b": uni(ks[1], (16,), 2 * 2 * 3),
        "conv2_w": uni(ks[2], (2, 2, 16, 32), 2 * 2 * 16),
        "conv2_b": uni(ks[3], (32,), 2 * 2 * 16),
        "conv3_w": uni(ks[4], (2, 2, 32, 64), 2 * 2 * 32),
        "conv3_b": uni(ks[5], (64,), 2 * 2 * 32),
        "fc1_w": uni(ks[6], (64, hidden_size), 64),
        "fc1_b": uni(ks[7], (hidden_size,), 64),
        "head_w": uni(ks[8], (hidden_size, output_dim), hidden_size),
        "head_b": uni(ks[9], (output_dim,), hidden_size),
    }


# ----------------------------------------------------------------------------
# Pure-JAX reference with the SAME cast structure (f32 accumulation).
# ----------------------------------------------------------------------------
def _ref_forward(x, params, dtype):
    f32 = jnp.float32
    c = lambda a: a.astype(dtype)

    def conv2x2(h, w, b):
        Bn, Hn, Wn, _ = h.shape
        Ho, Wo = Hn - 1, Wn - 1
        acc = None
        for dy in range(2):
            for dx in range(2):
                t = jax.lax.dot_general(h[:, dy:dy + Ho, dx:dx + Wo, :], w[dy, dx],
                                        (((3,), (0,)), ((), ())),
                                        preferred_element_type=f32)
                acc = t if acc is None else acc + t
        return jnp.maximum(acc + b.astype(f32), 0.0)

    h1 = conv2x2(c(x), c(params["conv1_w"]), params["conv1_b"])
    Bn, Hn, Wn, C = h1.shape
    Hp, Wp = Hn // 2, Wn // 2
    p1 = jnp.max(h1[:, :2 * Hp, :2 * Wp, :].reshape(Bn, Hp, 2, Wp, 2, C), axis=(2, 4))
    h2 = conv2x2(c(p1), c(params["conv2_w"]), params["conv2_b"])
    h3 = conv2x2(c(h2), c(params["conv3_w"]), params["conv3_b"]).reshape(Bn, -1)
    f = jnp.maximum(jnp.dot(c(h3), c(params["fc1_w"]), preferred_element_type=f32)
                    + params["fc1_b"].astype(f32), 0.0)
    q = (jnp.dot(c(f), c(params["head_w"]), preferred_element_type=f32)
         + params["head_b"].astype(f32))
    mean = jax.nn.softmax(q, axis=1)
    action = jnp.argmax(q, axis=1)[:, None].astype(jnp.int32)
    return action, mean, q


if __name__ == "__main__":
    key = jax.random.PRNGKey(0)
    kx, kp, kx2 = jax.random.split(key, 3)

    # input_dim = (7, 7): ((7-1)//2 - 2) == 1, so conv3 output is 1x1 and the
    # flatten yields exactly 64 features, matching nn.Linear(64, hidden_size).
    B, H, W, C = 2, 7, 7, 3
    hidden_size, output_dim = 32, 4

    x = jax.random.normal(kx, (B, H, W, C), dtype=jnp.float32)
    params = init_params(kp, hidden_size=hidden_size, output_dim=output_dim)

    # ---- f32 path (tb == B, grid=(1,)): tight check against the reference.
    a32, m32, q32 = jax.block_until_ready(policy_forward(x, params, dtype=jnp.float32))
    a_r, m_r, q_r = _ref_forward(x, params, jnp.float32)
    assert a32.shape == (B, 1) and m32.shape == (B, output_dim) and q32.shape == (B, output_dim)
    assert jnp.allclose(q32, q_r, atol=1e-4, rtol=1e-4), "q mismatch (f32)"
    assert jnp.allclose(m32, m_r, atol=1e-4, rtol=1e-3), "softmax mismatch (f32)"
    assert bool(jnp.all(a32 == a_r)), "argmax action mismatch (f32)"

    # ---- bf16 storage / f32 accumulation, multi-tile grid (B=16, tb=8, grid=(2,)).
    # NOTE: bf16 weights/activations can flip the argmax on near-tied q values
    # relative to the f32 PyTorch forward — intentional; only q/mean checked.
    B2 = 16
    x2 = jax.random.normal(kx2, (B2, H, W, C), dtype=jnp.float32)
    a16, m16, q16 = jax.block_until_ready(
        policy_forward(x2, params, dtype=jnp.bfloat16, batch_tile=8))
    _, m16_r, q16_r = _ref_forward(x2, params, jnp.bfloat16)
    assert a16.shape == (B2, 1) and q16.shape == (B2, output_dim)
    assert jnp.allclose(q16, q16_r, atol=2e-2, rtol=5e-2), "q mismatch (bf16)"
    assert jnp.allclose(m16, m16_r, atol=2e-2), "softmax mismatch (bf16)"

    print("KERNEL_OK")
</pallas_src>

<mosaic_0001>
module attributes {stable_mosaic.version = 11 : i64} {
  func.func @_policy_fwd_kernel(%arg0: i32, %arg1: memref<2x147xf32, #tpu.memory_space<vmem>>, %arg2: memref<4x147x144xf32, #tpu.memory_space<vmem>>, %arg3: memref<144x128xf32, #tpu.memory_space<vmem>>, %arg4: memref<128x64xf32, #tpu.memory_space<vmem>>, %arg5: memref<64x32xf32, #tpu.memory_space<vmem>>, %arg6: memref<32x4xf32, #tpu.memory_space<vmem>>, %arg7: memref<1x144xf32, #tpu.memory_space<vmem>>, %arg8: memref<1x128xf32, #tpu.memory_space<vmem>>, %arg9: memref<1x64xf32, #tpu.memory_space<vmem>>, %arg10: memref<1x32xf32, #tpu.memory_space<vmem>>, %arg11: memref<1x4xf32, #tpu.memory_space<vmem>>, %arg12: memref<2x1xi32, #tpu.memory_space<vmem>>, %arg13: memref<2x4xf32, #tpu.memory_space<vmem>>, %arg14: memref<2x4xf32, #tpu.memory_space<vmem>>) attributes {dimension_semantics = [#tpu.dimension_semantics<parallel>], iteration_bounds = array<i64: 1>, scalar_prefetch = 0 : i64, scratch_operands = 0 : i64, tpu.core_type = #tpu.core_type<tc>, window_params = [{transform_indices = @transform_0, window_bounds = array<i64: 2, 147>}, {pipeline_mode = #tpu.pipeline_mode<synchronous>, transform_indices = @transform_1, window_bounds = array<i64: 4, 147, 144>}, {pipeline_mode = #tpu.pipeline_mode<synchronous>, transform_indices = @transform_2, window_bounds = array<i64: 144, 128>}, {pipeline_mode = #tpu.pipeline_mode<synchronous>, transform_indices = @transform_3, window_bounds = array<i64: 128, 64>}, {pipeline_mode = #tpu.pipeline_mode<synchronous>, transform_indices = @transform_4, window_bounds = array<i64: 64, 32>}, {pipeline_mode = #tpu.pipeline_mode<synchronous>, transform_indices = @transform_5, window_bounds = array<i64: 32, 4>}, {pipeline_mode = #tpu.pipeline_mode<synchronous>, transform_indices = @transform_6, window_bounds = array<i64: 1, 144>}, {pipeline_mode = #tpu.pipeline_mode<synchronous>, transform_indices = @transform_7, window_bounds = array<i64: 1, 128>}, {pipeline_mode = #tpu.pipeline_mode<synchronous>, transform_indices = @transform_8, window_bounds = array<i64: 1, 64>}, {pipeline_mode = #tpu.pipeline_mode<synchronous>, transform_indices = @transform_9, window_bounds = array<i64: 1, 32>}, {pipeline_mode = #tpu.pipeline_mode<synchronous>, transform_indices = @transform_10, window_bounds = array<i64: 1, 4>}, {transform_indices = @transform_11, window_bounds = array<i64: 2, 1>}, {transform_indices = @transform_12, window_bounds = array<i64: 2, 4>}, {transform_indices = @transform_13, window_bounds = array<i64: 2, 4>}]} {
    %c0 = arith.constant 0 : index
    %c0_0 = arith.constant 0 : index
    %0 = vector.load %arg1[%c0, %c0_0] : memref<2x147xf32, #tpu.memory_space<vmem>>, vector<2x147xf32>
    %c0_1 = arith.constant 0 : index
    %c0_2 = arith.constant 0 : index
    %c0_3 = arith.constant 0 : index
    %1 = vector.load %arg2[%c0_1, %c0_2, %c0_3] : memref<4x147x144xf32, #tpu.memory_space<vmem>>, vector<1x147x144xf32>
    %2 = vector.shape_cast %1 : vector<1x147x144xf32> to vector<147x144xf32>
    %cst = arith.constant dense<0.000000e+00> : vector<2x144xf32>
    %3 = tpu.matmul %0, %2, %cst {dimension_numbers = #tpu.dot_dimension_numbers<[1], [0], [0], [1], [0, 0, 1, 1], [], []>} : vector<2x147xf32>, vector<147x144xf32>, vector<2x144xf32> -> vector<2x144xf32>
    %c1 = arith.constant 1 : index
    %c0_4 = arith.constant 0 : index
    %c0_5 = arith.constant 0 : index
    %4 = vector.load %arg2[%c1, %c0_4, %c0_5] : memref<4x147x144xf32, #tpu.memory_space<vmem>>, vector<1x147x144xf32>
    %5 = vector.shape_cast %4 : vector<1x147x144xf32> to vector<147x144xf32>
    %cst_6 = arith.constant dense<0.000000e+00> : vector<2x144xf32>
    %6 = tpu.matmul %0, %5, %cst_6 {dimension_numbers = #tpu.dot_dimension_numbers<[1], [0], [0], [1], [0, 0, 1, 1], [], []>} : vector<2x147xf32>, vector<147x144xf32>, vector<2x144xf32> -> vector<2x144xf32>
    %7 = arith.maximumf %3, %6 : vector<2x144xf32>
    %c2 = arith.constant 2 : index
    %c0_7 = arith.constant 0 : index
    %c0_8 = arith.constant 0 : index
    %8 = vector.load %arg2[%c2, %c0_7, %c0_8] : memref<4x147x144xf32, #tpu.memory_space<vmem>>, vector<1x147x144xf32>
    %9 = vector.shape_cast %8 : vector<1x147x144xf32> to vector<147x144xf32>
    %cst_9 = arith.constant dense<0.000000e+00> : vector<2x144xf32>
    %10 = tpu.matmul %0, %9, %cst_9 {dimension_numbers = #tpu.dot_dimension_numbers<[1], [0], [0], [1], [0, 0, 1, 1], [], []>} : vector<2x147xf32>, vector<147x144xf32>, vector<2x144xf32> -> vector<2x144xf32>
    %11 = arith.maximumf %7, %10 : vector<2x144xf32>
    %c3 = arith.constant 3 : index
    %c0_10 = arith.constant 0 : index
    %c0_11 = arith.constant 0 : index
    %12 = vector.load %arg2[%c3, %c0_10, %c0_11] : memref<4x147x144xf32, #tpu.memory_space<vmem>>, vector<1x147x144xf32>
    %13 = vector.shape_cast %12 : vector<1x147x144xf32> to vector<147x144xf32>
    %cst_12 = arith.constant dense<0.000000e+00> : vector<2x144xf32>
    %14 = tpu.matmul %0, %13, %cst_12 {dimension_numbers = #tpu.dot_dimension_numbers<[1], [0], [0], [1], [0, 0, 1, 1], [], []>} : vector<2x147xf32>, vector<147x144xf32>, vector<2x144xf32> -> vector<2x144xf32>
    %15 = arith.maximumf %11, %14 : vector<2x144xf32>
    %c0_13 = arith.constant 0 : index
    %c0_14 = arith.constant 0 : index
    %16 = vector.load %arg7[%c0_13, %c0_14] : memref<1x144xf32, #tpu.memory_space<vmem>>, vector<1x144xf32>
    %17 = vector.broadcast %16 : vector<1x144xf32> to vector<2x144xf32>
    %18 = arith.addf %15, %17 : vector<2x144xf32>
    %cst_15 = arith.constant 0.000000e+00 : f32
    %19 = vector.broadcast %cst_15 : f32 to vector<2x144xf32>
    %20 = arith.maximumf %18, %19 : vector<2x144xf32>
    %c0_16 = arith.constant 0 : index
    %c0_17 = arith.constant 0 : index
    %21 = vector.load %arg3[%c0_16, %c0_17] : memref<144x128xf32, #tpu.memory_space<vmem>>, vector<144x128xf32>
    %cst_18 = arith.constant dense<0.000000e+00> : vector<2x128xf32>
    %22 = tpu.matmul %20, %21, %cst_18 {dimension_numbers = #tpu.dot_dimension_numbers<[1], [0], [0], [1], [0, 0, 1, 1], [], []>} : vector<2x144xf32>, vector<144x128xf32>, vector<2x128xf32> -> vector<2x128xf32>
    %c0_19 = arith.constant 0 : index
    %c0_20 = arith.constant 0 : index
    %23 = vector.load %arg8[%c0_19, %c0_20] : memref<1x128xf32, #tpu.memory_space<vmem>>, vector<1x128xf32>
    %24 = vector.broadcast %23 : vector<1x128xf32> to vector<2x128xf32>
    %25 = arith.addf %22, %24 : vector<2x128xf32>
    %cst_21 = arith.constant 0.000000e+00 : f32
    %26 = vector.broadcast %cst_21 : f32 to vector<2x128xf32>
    %27 = arith.maximumf %25, %26 : vector<2x128xf32>
    %c0_22 = arith.constant 0 : index
    %c0_23 = arith.constant 0 : index
    %28 = vector.load %arg4[%c0_22, %c0_23] : memref<128x64xf32, #tpu.memory_space<vmem>>, vector<128x64xf32>
    %cst_24 = arith.constant dense<0.000000e+00> : vector<2x64xf32>
    %29 = tpu.matmul %27, %28, %cst_24 {dimension_numbers = #tpu.dot_dimension_numbers<[1], [0], [0], [1], [0, 0, 1, 1], [], []>} : vector<2x128xf32>, vector<128x64xf32>, vector<2x64xf32> -> vector<2x64xf32>
    %c0_25 = arith.constant 0 : index
    %c0_26 = arith.constant 0 : index
    %30 = vector.load %arg9[%c0_25, %c0_26] : memref<1x64xf32, #tpu.memory_space<vmem>>, vector<1x64xf32>
    %31 = vector.broadcast %30 : vector<1x64xf32> to vector<2x64xf32>
    %32 = arith.addf %29, %31 : vector<2x64xf32>
    %cst_27 = arith.constant 0.000000e+00 : f32
    %33 = vector.broadcast %cst_27 : f32 to vector<2x64xf32>
    %34 = arith.maximumf %32, %33 : vector<2x64xf32>
    %c0_28 = arith.constant 0 : index
    %c0_29 = arith.constant 0 : index
    %35 = vector.load %arg5[%c0_28, %c0_29] : memref<64x32xf32, #tpu.memory_space<vmem>>, vector<64x32xf32>
    %cst_30 = arith.constant dense<0.000000e+00> : vector<2x32xf32>
    %36 = tpu.matmul %34, %35, %cst_30 {dimension_numbers = #tpu.dot_dimension_numbers<[1], [0], [0], [1], [0, 0, 1, 1], [], []>} : vector<2x64xf32>, vector<64x32xf32>, vector<2x32xf32> -> vector<2x32xf32>
    %c0_31 = arith.constant 0 : index
    %c0_32 = arith.constant 0 : index
    %37 = vector.load %arg10[%c0_31, %c0_32] : memref<1x32xf32, #tpu.memory_space<vmem>>, vector<1x32xf32>
    %38 = vector.broadcast %37 : vector<1x32xf32> to vector<2x32xf32>
    %39 = arith.addf %36, %38 : vector<2x32xf32>
    %cst_33 = arith.constant 0.000000e+00 : f32
    %40 = vector.broadcast %cst_33 : f32 to vector<2x32xf32>
    %41 = arith.maximumf %39, %40 : vector<2x32xf32>
    %c0_34 = arith.constant 0 : index
    %c0_35 = arith.constant 0 : index
    %42 = vector.load %arg6[%c0_34, %c0_35] : memref<32x4xf32, #tpu.memory_space<vmem>>, vector<32x4xf32>
    %cst_36 = arith.constant dense<0.000000e+00> : vector<2x4xf32>
    %43 = tpu.matmul %41, %42, %cst_36 {dimension_numbers = #tpu.dot_dimension_numbers<[1], [0], [0], [1], [0, 0, 1, 1], [], []>} : vector<2x32xf32>, vector<32x4xf32>, vector<2x4xf32> -> vector<2x4xf32>
    %c0_37 = arith.constant 0 : index
    %c0_38 = arith.constant 0 : index
    %44 = vector.load %arg11[%c0_37, %c0_38] : memref<1x4xf32, #tpu.memory_space<vmem>>, vector<1x4xf32>
    %45 = vector.broadcast %44 : vector<1x4xf32> to vector<2x4xf32>
    %46 = arith.addf %43, %45 : vector<2x4xf32>
    %c0_39 = arith.constant 0 : index
    %c0_40 = arith.constant 0 : index
    %47 = vector.load %arg14[%c0_39, %c0_40] : memref<2x4xf32, #tpu.memory_space<vmem>>, vector<2x4xf32>
    tpu.vector_store %arg14[%c0_39, %c0_40], %46 {strides = array<i32>} : memref<2x4xf32, #tpu.memory_space<vmem>>, vector<2x4xf32>,
    %cst_41 = arith.constant dense<0xFF800000> : vector<2xf32>
    %48 = vector.multi_reduction <maximumf>, %46, %cst_41 [1] : vector<2x4xf32> to vector<2xf32>
    %49 = vector.shape_cast %48 : vector<2xf32> to vector<2x1xf32>
    %50 = vector.broadcast %49 : vector<2x1xf32> to vector<2x4xf32>
    %51 = arith.subf %46, %50 : vector<2x4xf32>
    %52 = math.exp %51 : vector<2x4xf32>
    %cst_42 = arith.constant dense<0.000000e+00> : vector<2xf32>
    %53 = vector.multi_reduction <add>, %52, %cst_42 [1] : vector<2x4xf32> to vector<2xf32>
    %54 = vector.shape_cast %53 : vector<2xf32> to vector<2x1xf32>
    %55 = tpu.reciprocal %54 {approx = true} : vector<2x1xf32> -> vector<2x1xf32>
    %56 = arith.mulf %54, %55 : vector<2x1xf32>
    %cst_43 = arith.constant 2.000000e+00 : f32
    %57 = vector.broadcast %cst_43 : f32 to vector<2x1xf32>
    %58 = arith.subf %57, %56 : vector<2x1xf32>
    %59 = arith.mulf %55, %58 : vector<2x1xf32>
    %60 = vector.broadcast %59 : vector<2x1xf32> to vector<2x4xf32>
    %61 = arith.mulf %52, %60 : vector<2x4xf32>
    %c0_44 = arith.constant 0 : index
    %c0_45 = arith.constant 0 : index
    %62 = vector.load %arg13[%c0_44, %c0_45] : memref<2x4xf32, #tpu.memory_space<vmem>>, vector<2x4xf32>
    tpu.vector_store %arg13[%c0_44, %c0_45], %61 {strides = array<i32>} : memref<2x4xf32, #tpu.memory_space<vmem>>, vector<2x4xf32>,
    %63 = tpu.iota {dimensions = array<i32: 1>} : vector<2x4xi32>
    %64 = arith.sitofp %63 : vector<2x4xi32> to vector<2x4xf32>
    %65 = vector.broadcast %49 : vector<2x1xf32> to vector<2x4xf32>
    %66 = arith.cmpf oge, %46, %65 : vector<2x4xf32>
    %cst_46 = arith.constant 4.000000e+00 : f32
    %67 = vector.broadcast %cst_46 : f32 to vector<2x4xf32>
    %68 = arith.select %66, %64, %67 : vector<2x4xi1>, vector<2x4xf32>
    %cst_47 = arith.constant dense<0x7F800000> : vector<2xf32>
    %69 = vector.multi_reduction <minimumf>, %68, %cst_47 [1] : vector<2x4xf32> to vector<2xf32>
    %70 = vector.shape_cast %69 : vector<2xf32> to vector<2x1xf32>
    %71 = arith.fptosi %70 : vector<2x1xf32> to vector<2x1xi32>
    %c0_48 = arith.constant 0 : index
    %c0_49 = arith.constant 0 : index
    %72 = vector.load %arg12[%c0_48, %c0_49] : memref<2x1xi32, #tpu.memory_space<vmem>>, vector<2x1xi32>
    tpu.vector_store %arg12[%c0_48, %c0_49], %71 {strides = array<i32>} : memref<2x1xi32, #tpu.memory_space<vmem>>, vector<2x1xi32>,
    return
  }
  func.func @transform_0(%arg0: i32) -> (i32, i32) {
    %c0_i32 = arith.constant 0 : i32
    %c0_i32_0 = arith.constant 0 : i32
    return %arg0, %c0_i32 : i32, i32
  }
  func.func @transform_1(%arg0: i32) -> (i32, i32, i32) {
    %c0_i32 = arith.constant 0 : i32
    %c0_i32_0 = arith.constant 0 : i32
    %c0_i32_1 = arith.constant 0 : i32
    %c0_i32_2 = arith.constant 0 : i32
    return %c0_i32, %c0_i32_0, %c0_i32_1 : i32, i32, i32
  }
  func.func @transform_2(%arg0: i32) -> (i32, i32) {
    %c0_i32 = arith.constant 0 : i32
    %c0_i32_0 = arith.constant 0 : i32
    %c0_i32_1 = arith.constant 0 : i32
    return %c0_i32, %c0_i32_0 : i32, i32
  }
  func.func @transform_3(%arg0: i32) -> (i32, i32) {
    %c0_i32 = arith.constant 0 : i32
    %c0_i32_0 = arith.constant 0 : i32
    %c0_i32_1 = arith.constant 0 : i32
    return %c0_i32, %c0_i32_0 : i32, i32
  }
  func.func @transform_4(%arg0: i32) -> (i32, i32) {
    %c0_i32 = arith.constant 0 : i32
    %c0_i32_0 = arith.constant 0 : i32
    %c0_i32_1 = arith.constant 0 : i32
    return %c0_i32, %c0_i32_0 : i32, i32
  }
  func.func @transform_5(%arg0: i32) -> (i32, i32) {
    %c0_i32 = arith.constant 0 : i32
    %c0_i32_0 = arith.constant 0 : i32
    %c0_i32_1 = arith.constant 0 : i32
    return %c0_i32, %c0_i32_0 : i32, i32
  }
  func.func @transform_6(%arg0: i32) -> (i32, i32) {
    %c0_i32 = arith.constant 0 : i32
    %c0_i32_0 = arith.constant 0 : i32
    %c0_i32_1 = arith.constant 0 : i32
    return %c0_i32, %c0_i32_0 : i32, i32
  }
  func.func @transform_7(%arg0: i32) -> (i32, i32) {
    %c0_i32 = arith.constant 0 : i32
    %c0_i32_0 = arith.constant 0 : i32
    %c0_i32_1 = arith.constant 0 : i32
    return %c0_i32, %c0_i32_0 : i32, i32
  }
  func.func @transform_8(%arg0: i32) -> (i32, i32) {
    %c0_i32 = arith.constant 0 : i32
    %c0_i32_0 = arith.constant 0 : i32
    %c0_i32_1 = arith.constant 0 : i32
    return %c0_i32, %c0_i32_0 : i32, i32
  }
  func.func @transform_9(%arg0: i32) -> (i32, i32) {
    %c0_i32 = arith.constant 0 : i32
    %c0_i32_0 = arith.constant 0 : i32
    %c0_i32_1 = arith.constant 0 : i32
    return %c0_i32, %c0_i32_0 : i32, i32
  }
  func.func @transform_10(%arg0: i32) -> (i32, i32) {
    %c0_i32 = arith.constant 0 : i32
    %c0_i32_0 = arith.constant 0 : i32
    %c0_i32_1 = arith.constant 0 : i32
    return %c0_i32, %c0_i32_0 : i32, i32
  }
  func.func @transform_11(%arg0: i32) -> (i32, i32) {
    %c0_i32 = arith.constant 0 : i32
    %c0_i32_0 = arith.constant 0 : i32
    return %arg0, %c0_i32 : i32, i32
  }
  func.func @transform_12(%arg0: i32) -> (i32, i32) {
    %c0_i32 = arith.constant 0 : i32
    %c0_i32_0 = arith.constant 0 : i32
    return %arg0, %c0_i32 : i32, i32
  }
  func.func @transform_13(%arg0: i32) -> (i32, i32) {
    %c0_i32 = arith.constant 0 : i32
    %c0_i32_0 = arith.constant 0 : i32
    return %arg0, %c0_i32 : i32, i32
  }
}

</mosaic_0001>

<bundles_post_ra>
// kernel: tile.14
= control target key start
LH: loop header
LB: loop body
LE: loop exit
PB: predicated region body
PF: predicated region fallthrough
CT: control target
= control target key end

     0   :  { %s77_s10 = smov 112   ;;  %s78_s11 = smov 80   ;;  %vm4_vm0 = vcmask 130048   ;;  %vm10_vm1 = vcmask 1048448   ;;  %vm16_vm2 = vcmask 917248   ;;  %vm22_vm3 = vcmask 786048   ;;  %s124_s0 = inlined_call_operand.vmem [shape: f32[9,16], index: 0, kind: input, shape index: {}]   ;;  %s125_s1 = inlined_call_operand.vmem [shape: f32[1,144], index: 1, kind: output, shape index: {}]  }
   0x1   :  { %v62_v0 = vld [vmem:[%s124_s0 + $0x7] sm:$0x1]   ;;  %v64_v1 = vld [vmem:[%s124_s0 + $0x5] sm:$0x1]   ;;  %v63_v2 = vld [vmem:[%s124_s0 + $0x6] sm:$0x1]  }
   0x2   :  { %8 = vrot.lane.b32.xlu0 %v62_v0, %s77_s10  ;;  %20 = vrot.lane.b32.xlu1 %v64_v1, %s78_s11  ;;  %v65_v3 = vld [vmem:[%s124_s0 + $0x4] sm:$0x1]   ;;  %s2_s16 = smov 3  ;;  %s79_s19 = smov 96   ;;  %v66_v5 = vld [vmem:[%s124_s0 + $0x3] sm:$0x1]  }
   0x3   :  { %v3_v4 = vld [vmem:[%s124_s0] ss:$8 sm:%s2_s16]   ;;  %s80_s20 = smov 64   ;;  %v67_v6 = vld [vmem:[%s124_s0 + $0x2] sm:$0x1]   ;;  %s81_s25 = smov 48  }
   0x4   :  { %5 = vst.msk [vmem:[#allocation0] ss:$8 sm:$0x3] %vm4_vm0, %v3_v4   ;;  %s82_s26 = smov 32   ;;  %v68_v7 = vld [vmem:[%s124_s0 + $0x1] sm:$0x1]  }
   0x5   :  { %s83_s0 = smov 16   ;;  %vm28_vm4 = vcmask 654848   ;;  %vm34_vm5 = vcmask 523648   ;;  %vm40_vm6 = vcmask 392448   ;;  %vm46_vm7 = vcmask 261248  }
   0x6   :  { %14 = vrot.lane.b32.xlu0 %v63_v2, %s79_s19  ;;  %26 = vrot.lane.b32.xlu1 %v65_v3, %s80_s20 }
   0xa   :  { %32 = vrot.lane.b32.xlu0 %v66_v5, %s81_s25  ;;  %38 = vrot.lane.b32.xlu1 %v67_v6, %s82_s26 }
   0xb   :  { %v57_v8 = vld [vmem:[#allocation0 + $0x8] sm:$0x1] }
   0xc   :  { %69 = vst [vmem:[%s125_s1 + $0x1] sm:$0x1] %v57_v8 }
   0xe   :  { %44 = vrot.lane.b32.xlu0 %v68_v7, %s83_s0 }
  0x74   :  { %v9_v9 = vpop.permute.xlu0 %8   ;;  %v21_v10 = vpop.permute.xlu1 %20  }
  0x75   :  { %11 = vst.msk [vmem:[#allocation0] sm:$0x1] %vm10_vm1, %v9_v9  }
  0x78   :  { %v15_v11 = vpop.permute.xlu0 %14   ;;  %v27_v12 = vpop.permute.xlu1 %26  }
  0x79   :  { %17 = vst.msk [vmem:[#allocation0] sm:$0x1] %vm16_vm2, %v15_v11  }
  0x7a   :  { %23 = vst.msk [vmem:[#allocation0] sm:$0x1] %vm22_vm3, %v21_v10  }
  0x7b   :  { %29 = vst.msk [vmem:[#allocation0] sm:$0x1] %vm28_vm4, %v27_v12  }
  0x7c   :  { %v33_v13 = vpop.permute.xlu0 %32   ;;  %v39_v14 = vpop.permute.xlu1 %38  }
  0x7d   :  { %35 = vst.msk [vmem:[#allocation0] sm:$0x1] %vm34_vm5, %v33_v13  }
  0x7e   :  { %41 = vst.msk [vmem:[#allocation0] sm:$0x1] %vm40_vm6, %v39_v14  }
  0x80   :  { %v45_v15 = vpop.permute.xlu0 %44  }
  0x81   :  { %47 = vst.msk [vmem:[#allocation0] sm:$0x1] %vm46_vm7, %v45_v15  }
  0x88   :  { %v52_v16 = vld [vmem:[#allocation0] sm:$0x1] }
  0x89   :  { %55 = vst [vmem:[%s125_s1] sm:$0x1] %v52_v16 }

// kernel: tile.13
= control target key start
LH: loop header
LB: loop body
LE: loop exit
PB: predicated region body
PF: predicated region fallthrough
CT: control target
= control target key end

     0   :  { %s28_s0 = inlined_call_operand.vmem [shape: f32[16], index: 0, kind: input, shape index: {}]   ;;  %s29_s1 = inlined_call_operand.vmem [shape: f32[9,16], index: 1, kind: output, shape index: {}]  }
   0x1   :  { %v4_v0 = vld [vmem:[%s28_s0] ss:$0 sm:$0xff] }
   0x2   :  { %5 = vst [vmem:[%s29_s1] sm:$0xff] %v4_v0  ;;  %8 = vst [vmem:[%s29_s1 + $0x8] sm:$0xff] %v4_v0 }

// kernel: tile.18
= control target key start
LH: loop header
LB: loop body
LE: loop exit
PB: predicated region body
PF: predicated region fallthrough
CT: control target
= control target key end

     0   :  { %s22_s0 = inlined_call_operand.vmem [shape: f32[32], index: 0, kind: input, shape index: {}]   ;;  %s23_s1 = inlined_call_operand.vmem [shape: f32[4,32], index: 1, kind: output, shape index: {}]  }
   0x1   :  { %v4_v0 = vld [vmem:[%s22_s0] ss:$0 sm:$0xff] }
   0x2   :  { %5 = vst [vmem:[%s23_s1] sm:$0xf] %v4_v0 }

// kernel: tile.19
= control target key start
LH: loop header
LB: loop body
LE: loop exit
PB: predicated region body
PF: predicated region fallthrough
CT: control target
= control target key end

     0   :  { %vm8_vm0 = vcmask 261120   ;;  %s40_s8 = smov 32   ;;  %s41_s9 = smov 64   ;;  %vm14_vm1 = vcmask 1048320   ;;  %vm20_vm2 = vcmask 785920   ;;  %vm26_vm3 = vcmask 523520   ;;  %s58_s0 = inlined_call_operand.vmem [shape: f32[4,32], index: 0, kind: input, shape index: {}]   ;;  %s59_s1 = inlined_call_operand.vmem [shape: f32[1,128], index: 1, kind: output, shape index: {}]  }
   0x1   :  { %v5_v0 = vld [vmem:[%s58_s0] sm:$0xf]  ;;  %s39_s0 = smov 96  }
   0x2   :  { %6 = vst [vmem:[#allocation1] sm:$0xf] %v5_v0 }
   0x9   :  { %v11_v1 = vld [vmem:[#allocation1 + $0x3] sm:$0x1]   ;;  %v23_v2 = vld [vmem:[#allocation1 + $0x1] sm:$0x1]   ;;  %v7_v3 = vld [vmem:[#allocation1] sm:$0x1]  }
   0xa   :  { %12 = vrot.lane.b32.xlu0 %v11_v1, %s39_s0  ;;  %24 = vrot.lane.b32.xlu1 %v23_v2, %s40_s8  ;;  %v17_v4 = vld [vmem:[#allocation1 + $0x2] sm:$0x1]   ;;  %9 = vst.msk [vmem:[#allocation0] sm:$0x1] %vm8_vm0, %v7_v3  }
   0xe   :  { %18 = vrot.lane.b32.xlu0 %v17_v4, %s41_s9 }
  0x7c   :  { %v13_v5 = vpop.permute.xlu0 %12   ;;  %v25_v6 = vpop.permute.xlu1 %24  }
  0x7d   :  { %15 = vst.msk [vmem:[#allocation0] sm:$0x1] %vm14_vm1, %v13_v5  }
  0x80   :  { %v19_v7 = vpop.permute.xlu0 %18  }
  0x81   :  { %21 = vst.msk [vmem:[#allocation0] sm:$0x1] %vm20_vm2, %v19_v7  }
  0x82   :  { %27 = vst.msk [vmem:[#allocation0] sm:$0x1] %vm26_vm3, %v25_v6  }
  0x89   :  { %v32_v8 = vld [vmem:[#allocation0] sm:$0x1] }
  0x8a   :  { %35 = vst [vmem:[%s59_s1] sm:$0x1] %v32_v8 }

// kernel: _policy_forward_impl.1
= control target key start
LH: loop header
LB: loop body
LE: loop exit
PB: predicated region body
PF: predicated region fallthrough
CT: control target
= control target key end

     0   :  { %19 = vsyncpa [#allocation3], 0  ;;  %vm95_vm0 = vcmask 1042432   ;;  %vm92_vm1 = vcmask 154624   ;;  %s2033_s0 = inlined_call_operand.vmem [shape: f32[2,147], index: 0, kind: input, shape index: {}]   ;;  %s2034_s1 = inlined_call_operand.vmem [shape: f32[4,147,144], index: 1, kind: input, shape index: {}]   ;;  %s2035_s2 = inlined_call_operand.vmem [shape: f32[144,128], index: 2, kind: input, shape index: {}]   ;;  %s2036_s3 = inlined_call_operand.vmem [shape: f32[128,64], index: 3, kind: input, shape index: {}]   ;;  %s2037_s4 = inlined_call_operand.vmem [shape: f32[64,32], index: 4, kind: input, shape index: {}]   ;;  %s2038_s5 = inlined_call_operand.vmem [shape: f32[32,4], index: 5, kind: input, shape index: {}]   ;;  %s2039_s6 = inlined_call_operand.vmem [shape: f32[1,144], index: 6, kind: input, shape index: {}]   ;;  %s2040_s7 = inlined_call_operand.vmem [shape: f32[1,128], index: 7, kind: input, shape index: {}]   ;;  %s2041_s8 = inlined_call_operand.vmem [shape: f32[1,64], index: 8, kind: input, shape index: {}]   ;;  %s2042_s9 = inlined_call_operand.vmem [shape: f32[1,32], index: 9, kind: input, shape index: {}]   ;;  %s2043_s10 = inlined_call_operand.vmem [shape: f32[1,4], index: 10, kind: input, shape index: {}]   ;;  %s2044_s11 = inlined_call_operand.vmem [shape: s32[2,1], index: 11, kind: output, shape index: {0}]   ;;  %s2045_s12 = inlined_call_operand.hbm [shape: f32[2,4], index: 12, kind: output, shape index: {1}]   ;;  %s2046_s13 = inlined_call_operand.hbm [shape: f32[2,4], index: 13, kind: output, shape index: {2}]  }
   0x1   :  { %v75_v0 = vld [vmem:[%s2034_s1 + $0xf8] sm:$0xff]  ;;  %v1007_v1 = vld [vmem:[%s2034_s1 + $0x228] sm:$0xff]  ;;  %v74_v2 = vld [vmem:[%s2034_s1 + $0xf0] sm:$0xff] }
   0x2   :  { %102 = vmatprep.subr.mxu0 %v75_v0  ;;  %218 = vmatprep.subr.mxu1 %v1007_v1  ;;  %v1006_v3 = vld [vmem:[%s2034_s1 + $0x220] sm:$0xff]  ;;  %v73_v4 = vld [vmem:[%s2034_s1 + $0xe8] sm:$0xff]  ;;  %v1005_v5 = vld [vmem:[%s2034_s1 + $0x218] sm:$0xff] }
   0x3   :  { %103 = vmatpush1.msra.mxu0 %v74_v2  ;;  %219 = vmatpush1.msra.mxu1 %v1006_v3  ;;  %v72_v6 = vld [vmem:[%s2034_s1 + $0xe0] sm:$0xff]  ;;  %v1004_v7 = vld [vmem:[%s2034_s1 + $0x210] sm:$0xff]  ;;  %v71_v8 = vld [vmem:[%s2034_s1 + $0xd8] sm:$0xff] }
   0x4   :  { %104 = vmatprep.subr.mxu0 %v73_v4  ;;  %220 = vmatprep.subr.mxu1 %v1005_v5  ;;  %v1003_v9 = vld [vmem:[%s2034_s1 + $0x208] sm:$0xff]  ;;  %v70_v10 = vld [vmem:[%s2034_s1 + $0xd0] sm:$0xff]  ;;  %v1002_v11 = vld [vmem:[%s2034_s1 + $0x200] sm:$0xff] }
   0x5   :  { %105 = vmatpush1.msra.mxu0 %v72_v6  ;;  %221 = vmatpush1.msra.mxu1 %v1004_v7  ;;  %v69_v12 = vld [vmem:[%s2034_s1 + $0xc8] sm:$0xff]  ;;  %v1001_v13 = vld [vmem:[%s2034_s1 + $0x1f8] sm:$0xff]  ;;  %v68_v14 = vld [vmem:[%s2034_s1 + $0xc0] sm:$0xff] }
   0x6   :  { %106 = vmatprep.subr.mxu0 %v71_v8  ;;  %222 = vmatprep.subr.mxu1 %v1003_v9  ;;  %v1000_v15 = vld [vmem:[%s2034_s1 + $0x1f0] sm:$0xff]  ;;  %v67_v16 = vld [vmem:[%s2034_s1 + $0xb8] sm:$0xff]  ;;  %v999_v17 = vld [vmem:[%s2034_s1 + $0x1e8] sm:$0xff] }
   0x7   :  { %107 = vmatpush1.msra.mxu0 %v70_v10  ;;  %223 = vmatpush1.msra.mxu1 %v1002_v11  ;;  %v66_v18 = vld [vmem:[%s2034_s1 + $0xb0] sm:$0xff]  ;;  %v998_v19 = vld [vmem:[%s2034_s1 + $0x1e0] sm:$0xff]  ;;  %v65_v20 = vld [vmem:[%s2034_s1 + $0xa8] sm:$0xff] }
   0x8   :  { %108 = vmatprep.subr.mxu0 %v69_v12  ;;  %224 = vmatprep.subr.mxu1 %v1001_v13  ;;  %v997_v21 = vld [vmem:[%s2034_s1 + $0x1d8] sm:$0xff]  ;;  %v64_v22 = vld [vmem:[%s2034_s1 + $0xa0] sm:$0xff]  ;;  %v996_v23 = vld [vmem:[%s2034_s1 + $0x1d0] sm:$0xff] }
   0x9   :  { %109 = vmatpush1.msra.mxu0 %v68_v14  ;;  %225 = vmatpush1.msra.mxu1 %v1000_v15  ;;  %v63_v24 = vld [vmem:[%s2034_s1 + $0x98] sm:$0xff]  ;;  %v995_v25 = vld [vmem:[%s2034_s1 + $0x1c8] sm:$0xff]  ;;  %v62_v26 = vld [vmem:[%s2034_s1 + $0x90] sm:$0xff] }
   0xa   :  { %110 = vmatprep.subr.mxu0 %v67_v16  ;;  %226 = vmatprep.subr.mxu1 %v999_v17  ;;  %v994_v27 = vld [vmem:[%s2034_s1 + $0x1c0] sm:$0xff]  ;;  %v61_v28 = vld [vmem:[%s2034_s1 + $0x88] sm:$0xff]  ;;  %v993_v29 = vld [vmem:[%s2034_s1 + $0x1b8] sm:$0xff] }
   0xb   :  { %111 = vmatpush1.msra.mxu0 %v66_v18  ;;  %227 = vmatpush1.msra.mxu1 %v998_v19  ;;  %v60_v30 = vld [vmem:[%s2034_s1 + $0x80] sm:$0xff]  ;;  %v992_v31 = vld [vmem:[%s2034_s1 + $0x1b0] sm:$0xff]  ;;  %v59_v32 = vld [vmem:[%s2034_s1 + $0x78] sm:$0xff] }
   0xc   :  { %112 = vmatprep.subr.mxu0 %v65_v20  ;;  %228 = vmatprep.subr.mxu1 %v997_v21  ;;  %v991_v33 = vld [vmem:[%s2034_s1 + $0x1a8] sm:$0xff]  ;;  %v58_v34 = vld [vmem:[%s2034_s1 + $0x70] sm:$0xff]  ;;  %v990_v35 = vld [vmem:[%s2034_s1 + $0x1a0] sm:$0xff] }
   0xd   :  { %113 = vmatpush1.msra.mxu0 %v64_v22  ;;  %229 = vmatpush1.msra.mxu1 %v996_v23  ;;  %v57_v36 = vld [vmem:[%s2034_s1 + $0x68] sm:$0xff]  ;;  %v989_v37 = vld [vmem:[%s2034_s1 + $0x198] sm:$0xff]  ;;  %v56_v38 = vld [vmem:[%s2034_s1 + $0x60] sm:$0xff] }
   0xe   :  { %114 = vmatprep.subr.mxu0 %v63_v24  ;;  %230 = vmatprep.subr.mxu1 %v995_v25  ;;  %v988_v39 = vld [vmem:[%s2034_s1 + $0x190] sm:$0xff]  ;;  %v55_v40 = vld [vmem:[%s2034_s1 + $0x58] sm:$0xff]  ;;  %v987_v41 = vld [vmem:[%s2034_s1 + $0x188] sm:$0xff] }
   0xf   :  { %115 = vmatpush1.msra.mxu0 %v62_v26  ;;  %231 = vmatpush1.msra.mxu1 %v994_v27  ;;  %v54_v42 = vld [vmem:[%s2034_s1 + $0x50] sm:$0xff]  ;;  %v986_v43 = vld [vmem:[%s2034_s1 + $0x180] sm:$0xff]  ;;  %v53_v44 = vld [vmem:[%s2034_s1 + $0x48] sm:$0xff] }
  0x10   :  { %116 = vmatprep.subr.mxu0 %v61_v28  ;;  %232 = vmatprep.subr.mxu1 %v993_v29  ;;  %v985_v45 = vld [vmem:[%s2034_s1 + $0x178] sm:$0xff]  ;;  %v52_v46 = vld [vmem:[%s2034_s1 + $0x40] sm:$0xff]  ;;  %v984_v47 = vld [vmem:[%s2034_s1 + $0x170] sm:$0xff] }
  0x11   :  { %117 = vmatpush1.msra.mxu0 %v60_v30  ;;  %233 = vmatpush1.msra.mxu1 %v992_v31  ;;  %v51_v48 = vld [vmem:[%s2034_s1 + $0x38] sm:$0xff]  ;;  %v983_v49 = vld [vmem:[%s2034_s1 + $0x168] sm:$0xff]  ;;  %v50_v50 = vld [vmem:[%s2034_s1 + $0x30] sm:$0xff] }
  0x12   :  { %118 = vmatprep.subr.mxu0 %v59_v32  ;;  %234 = vmatprep.subr.mxu1 %v991_v33  ;;  %v982_v51 = vld [vmem:[%s2034_s1 + $0x160] sm:$0xff]  ;;  %v49_v52 = vld [vmem:[%s2034_s1 + $0x28] sm:$0xff]  ;;  %v981_v53 = vld [vmem:[%s2034_s1 + $0x158] sm:$0xff] }
  0x13   :  { %119 = vmatpush1.msra.mxu0 %v58_v34  ;;  %235 = vmatpush1.msra.mxu1 %v990_v35  ;;  %v48_v54 = vld [vmem:[%s2034_s1 + $0x20] sm:$0xff]  ;;  %v980_v55 = vld [vmem:[%s2034_s1 + $0x150] sm:$0xff]  ;;  %v47_v56 = vld [vmem:[%s2034_s1 + $0x18] sm:$0xff] }
  0x14   :  { %120 = vmatprep.subr.mxu0 %v57_v36  ;;  %236 = vmatprep.subr.mxu1 %v989_v37  ;;  %v979_v57 = vld [vmem:[%s2034_s1 + $0x148] sm:$0xff]  ;;  %v46_v58 = vld [vmem:[%s2034_s1 + $0x10] sm:$0xff]  ;;  %v978_v59 = vld [vmem:[%s2034_s1 + $0x140] sm:$0xff] }
  0x15   :  { %121 = vmatpush1.msra.mxu0 %v56_v38  ;;  %237 = vmatpush1.msra.mxu1 %v988_v39  ;;  %v45_v60 = vld [vmem:[%s2034_s1 + $0x8] sm:$0xff]  ;;  %v977_v61 = vld [vmem:[%s2034_s1 + $0x138] sm:$0xff]  ;;  %v44_v62 = vld [vmem:[%s2034_s1] sm:$0xff] }
  0x16   :  { %122 = vmatprep.subr.mxu0 %v55_v40  ;;  %238 = vmatprep.subr.mxu1 %v987_v41  ;;  %v976_v63 = vld [vmem:[%s2034_s1 + $0x130] sm:$0xff]  ;;  %v81_v0 = vld [vmem:[%s2034_s1 + $0x128] sm:$0x7]  ;;  %v1013_v1 = vld [vmem:[%s2034_s1 + $0x258] sm:$0x7] }
  0x17   :  { %123 = vmatpush1.msra.mxu0 %v54_v42  ;;  %239 = vmatpush1.msra.mxu1 %v986_v43  ;;  %v80_v2 = vld [vmem:[%s2034_s1 + $0x120] sm:$0x7]  ;;  %v1012_v3 = vld [vmem:[%s2034_s1 + $0x250] sm:$0x7]  ;;  %v79_v5 = vld [vmem:[%s2034_s1 + $0x118] sm:$0xff] }
  0x18   :  { %124 = vmatprep.subr.mxu0 %v53_v44  ;;  %240 = vmatprep.subr.mxu1 %v985_v45  ;;  %v1537_v4 = vld.sshfl [vmem:[%s2033_s0] sm:$0x33 pattern:$0x76325410]  ;;  %v1011_v6 = vld [vmem:[%s2034_s1 + $0x248] sm:$0xff]  ;;  %v78_v7 = vld [vmem:[%s2034_s1 + $0x110] sm:$0xff] }
  0x19   :  { %125 = vmatpush1.msra.mxu0 %v52_v46  ;;  %241 = vmatpush1.msra.mxu1 %v984_v47  ;;  %v1010_v8 = vld [vmem:[%s2034_s1 + $0x240] sm:$0xff]  ;;  %v77_v9 = vld [vmem:[%s2034_s1 + $0x108] sm:$0xff]  ;;  %v1009_v10 = vld [vmem:[%s2034_s1 + $0x238] sm:$0xff]  ;;  %v1563_v11 = vcombine.high %v1537_v4, %v1537_v4 }
  0x1a   :  { %126 = vmatprep.subr.mxu0 %v51_v48  ;;  %242 = vmatprep.subr.mxu1 %v983_v49  ;;  %v76_v12 = vld [vmem:[%s2034_s1 + $0x100] sm:$0xff]  ;;  %v1008_v13 = vld [vmem:[%s2034_s1 + $0x230] sm:$0xff]  ;;  %v1048_v14 = vld [vmem:[%s2034_s1 + $0x358] sm:$0xff] }
  0x1b   :  { %127 = vmatpush1.msra.mxu0 %v50_v50  ;;  %243 = vmatpush1.msra.mxu1 %v982_v51  ;;  %v1089_v15 = vld [vmem:[%s2034_s1 + $0x488] sm:$0xff]  ;;  %v1047_v16 = vld [vmem:[%s2034_s1 + $0x350] sm:$0xff]  ;;  %v1088_v17 = vld [vmem:[%s2034_s1 + $0x480] sm:$0xff] }
  0x1c   :  { %128 = vmatprep.subr.mxu0 %v49_v52  ;;  %244 = vmatprep.subr.mxu1 %v981_v53  ;;  %v1046_v18 = vld [vmem:[%s2034_s1 + $0x348] sm:$0xff]  ;;  %v1087_v19 = vld [vmem:[%s2034_s1 + $0x478] sm:$0xff]  ;;  %v1045_v20 = vld [vmem:[%s2034_s1 + $0x340] sm:$0xff] }
  0x1d   :  { %129 = vmatpush1.msra.mxu0 %v48_v54  ;;  %245 = vmatpush1.msra.mxu1 %v980_v55  ;;  %v1086_v21 = vld [vmem:[%s2034_s1 + $0x470] sm:$0xff]  ;;  %v1044_v22 = vld [vmem:[%s2034_s1 + $0x338] sm:$0xff]  ;;  %v1085_v23 = vld [vmem:[%s2034_s1 + $0x468] sm:$0xff] }
  0x1e   :  { %130 = vmatprep.subr.mxu0 %v47_v56  ;;  %246 = vmatprep.subr.mxu1 %v979_v57  ;;  %v1043_v24 = vld [vmem:[%s2034_s1 + $0x330] sm:$0xff]  ;;  %v1084_v25 = vld [vmem:[%s2034_s1 + $0x460] sm:$0xff]  ;;  %v1042_v26 = vld [vmem:[%s2034_s1 + $0x328] sm:$0xff] }
  0x1f   :  { %131 = vmatpush1.msra.mxu0 %v46_v58  ;;  %247 = vmatpush1.msra.mxu1 %v978_v59  ;;  %v1083_v27 = vld [vmem:[%s2034_s1 + $0x458] sm:$0xff]  ;;  %v1041_v28 = vld [vmem:[%s2034_s1 + $0x320] sm:$0xff]  ;;  %v1082_v29 = vld [vmem:[%s2034_s1 + $0x450] sm:$0xff] }
  0x20   :  { %132 = vmatprep.subr.mxu0 %v45_v60  ;;  %248 = vmatprep.subr.mxu1 %v977_v61  ;;  %v1040_v30 = vld [vmem:[%s2034_s1 + $0x318] sm:$0xff]  ;;  %v1081_v31 = vld [vmem:[%s2034_s1 + $0x448] sm:$0xff]  ;;  %v1039_v32 = vld [vmem:[%s2034_s1 + $0x310] sm:$0xff] }
  0x21   :  { %133 = vmatpush1.msra.mxu0 %v44_v62  ;;  %249 = vmatpush1.msra.mxu1 %v976_v63  ;;  %v1080_v33 = vld [vmem:[%s2034_s1 + $0x440] sm:$0xff]  ;;  %v1038_v34 = vld [vmem:[%s2034_s1 + $0x308] sm:$0xff]  ;;  %v1079_v35 = vld [vmem:[%s2034_s1 + $0x438] sm:$0xff] }
  0x22   :  { %973 = vmatprep.subr.msk.mxu0 %vm95_vm0, %v81_v0  ;;  %1014 = vmatprep.subr.msk.mxu1 %vm95_vm0, %v1013_v1  ;;  %v1037_v36 = vld [vmem:[%s2034_s1 + $0x300] sm:$0xff]  ;;  %v1078_v37 = vld [vmem:[%s2034_s1 + $0x430] sm:$0xff]  ;;  %v1036_v38 = vld [vmem:[%s2034_s1 + $0x2f8] sm:$0xff] }
  0x23   :  { %974 = vmatpush2.msk.msra.mxu0 %vm95_vm0, %v80_v2  ;;  %1015 = vmatpush2.msk.msra.mxu1 %vm95_vm0, %v1012_v3  ;;  %v1077_v39 = vld [vmem:[%s2034_s1 + $0x428] sm:$0xff]  ;;  %v1035_v40 = vld [vmem:[%s2034_s1 + $0x2f0] sm:$0xff]  ;;  %v1076_v41 = vld [vmem:[%s2034_s1 + $0x420] sm:$0xff] }
  0x24   :  { %162 = vmatprep.subr.mxu0 %v79_v5  ;;  %278 = vmatprep.subr.mxu1 %v1011_v6 }
  0x25   :  { %163 = vmatpush2.msra.mxu0 %v78_v7  ;;  %279 = vmatpush2.msra.mxu1 %v1010_v8 }
  0x26   :  { %164 = vmatprep.subr.mxu0 %v77_v9  ;;  %280 = vmatprep.subr.mxu1 %v1009_v10 }
  0x27   :  { %165 = vmatpush2.msra.mxu0 %v76_v12  ;;  %975 = vmatprep.mubr.msk.f32.mxu0 %vm92_vm1, %v1563_v11 }
  0x28   :  { %281 = vmatpush2.msra.mxu1 %v1008_v13  ;;  %1016 = vmatprep.mubr.msk.f32.mxu1 %vm92_vm1, %v1563_v11 }
  0x29   :  { %167 = vmatmul.mubr.f32.vlgmr.msra.gmra.mxu0 %v1537_v4  ;;  %283 = vmatmul.mubr.f32.vlgmr.msra.gmra.mxu1 %v1537_v4 }
  0x2a   :  { %336 = vmatprep.subr.mxu0 %v1048_v14  ;;  %454 = vmatprep.subr.mxu1 %v1089_v15 }
  0x2b   :  { %337 = vmatpush1.msra.mxu0 %v1047_v16  ;;  %455 = vmatpush1.msra.mxu1 %v1088_v17 }
  0x2c   :  { %338 = vmatprep.subr.mxu0 %v1046_v18  ;;  %456 = vmatprep.subr.mxu1 %v1087_v19 }
  0x2d   :  { %339 = vmatpush1.msra.mxu0 %v1045_v20  ;;  %457 = vmatpush1.msra.mxu1 %v1086_v21 }
  0x2e   :  { %340 = vmatprep.subr.mxu0 %v1044_v22  ;;  %458 = vmatprep.subr.mxu1 %v1085_v23 }
  0x2f   :  { %341 = vmatpush1.msra.mxu0 %v1043_v24  ;;  %459 = vmatpush1.msra.mxu1 %v1084_v25 }
  0x30   :  { %342 = vmatprep.subr.mxu0 %v1042_v26  ;;  %460 = vmatprep.subr.mxu1 %v1083_v27 }
  0x31   :  { %343 = vmatpush1.msra.mxu0 %v1041_v28  ;;  %461 = vmatpush1.msra.mxu1 %v1082_v29 }
  0x32   :  { %344 = vmatprep.subr.mxu0 %v1040_v30  ;;  %462 = vmatprep.subr.mxu1 %v1081_v31 }
  0x33   :  { %345 = vmatpush1.msra.mxu0 %v1039_v32  ;;  %463 = vmatpush1.msra.mxu1 %v1080_v33 }
  0x34   :  { %346 = vmatprep.subr.mxu0 %v1038_v34  ;;  %464 = vmatprep.subr.mxu1 %v1079_v35 }
  0x35   :  { %20 = vsyncpa [#allocation5], 0  ;;  %347 = vmatpush1.msra.mxu0 %v1037_v36  ;;  %465 = vmatpush1.msra.mxu1 %v1078_v37  ;;  %v1034_v42 = vld [vmem:[%s2034_s1 + $0x2e8] sm:$0xff]  ;;  %v1075_v43 = vld [vmem:[%s2034_s1 + $0x418] sm:$0xff]  ;;  %v1256_v29 = vmov 0.0   ;;  %vm568_vm2 = vcmask 130048  }
  0x36   :  { %348 = vmatprep.subr.mxu0 %v1036_v38  ;;  %466 = vmatprep.subr.mxu1 %v1077_v39  ;;  %v1033_v44 = vld [vmem:[%s2034_s1 + $0x2e0] sm:$0xff]  ;;  %v1074_v45 = vld [vmem:[%s2034_s1 + $0x410] sm:$0xff]  ;;  %v1032_v46 = vld [vmem:[%s2034_s1 + $0x2d8] sm:$0xff]  ;;  %vm1257_vm3 = vmmov 0   ;;  %vm752_vm4 = vcmask 523264   ;;  %vm838_vm5 = vcmask 261120  }
  0x37   :  { %349 = vmatpush1.msra.mxu0 %v1035_v40  ;;  %467 = vmatpush1.msra.mxu1 %v1076_v41  ;;  %v1073_v47 = vld [vmem:[%s2034_s1 + $0x408] sm:$0xff]  ;;  %v1031_v48 = vld [vmem:[%s2034_s1 + $0x2d0] sm:$0xff]  ;;  %v1072_v49 = vld [vmem:[%s2034_s1 + $0x400] sm:$0xff]  ;;  %vm912_vm6 = vcmask 25600  }
  0x38   :  { %350 = vmatprep.subr.mxu0 %v1034_v42  ;;  %468 = vmatprep.subr.mxu1 %v1075_v43  ;;  %v1030_v50 = vld [vmem:[%s2034_s1 + $0x2c8] sm:$0xff]  ;;  %v1071_v51 = vld [vmem:[%s2034_s1 + $0x3f8] sm:$0xff]  ;;  %v1029_v52 = vld [vmem:[%s2034_s1 + $0x2c0] sm:$0xff] }
  0x39   :  { %351 = vmatpush1.msra.mxu0 %v1033_v44  ;;  %469 = vmatpush1.msra.mxu1 %v1074_v45  ;;  %v1070_v53 = vld [vmem:[%s2034_s1 + $0x3f0] sm:$0xff]  ;;  %v1028_v54 = vld [vmem:[%s2034_s1 + $0x2b8] sm:$0xff]  ;;  %v1069_v55 = vld [vmem:[%s2034_s1 + $0x3e8] sm:$0xff] }
  0x3a   :  { %352 = vmatprep.subr.mxu0 %v1032_v46  ;;  %470 = vmatprep.subr.mxu1 %v1073_v47  ;;  %v1027_v56 = vld [vmem:[%s2034_s1 + $0x2b0] sm:$0xff]  ;;  %v1068_v57 = vld [vmem:[%s2034_s1 + $0x3e0] sm:$0xff]  ;;  %v1026_v58 = vld [vmem:[%s2034_s1 + $0x2a8] sm:$0xff] }
  0x3b   :  { %353 = vmatpush1.msra.mxu0 %v1031_v48  ;;  %471 = vmatpush1.msra.mxu1 %v1072_v49  ;;  %v1067_v59 = vld [vmem:[%s2034_s1 + $0x3d8] sm:$0xff]  ;;  %v1025_v60 = vld [vmem:[%s2034_s1 + $0x2a0] sm:$0xff]  ;;  %v1066_v61 = vld [vmem:[%s2034_s1 + $0x3d0] sm:$0xff] }
  0x3c   :  { %354 = vmatprep.subr.mxu0 %v1030_v50  ;;  %472 = vmatprep.subr.mxu1 %v1071_v51  ;;  %v1024_v62 = vld [vmem:[%s2034_s1 + $0x298] sm:$0xff]  ;;  %v1065_v63 = vld [vmem:[%s2034_s1 + $0x3c8] sm:$0xff]  ;;  %v1023_v0 = vld [vmem:[%s2034_s1 + $0x290] sm:$0xff] }
  0x3d   :  { %355 = vmatpush1.msra.mxu0 %v1029_v52  ;;  %473 = vmatpush1.msra.mxu1 %v1070_v53  ;;  %v1064_v1 = vld [vmem:[%s2034_s1 + $0x3c0] sm:$0xff]  ;;  %v1022_v2 = vld [vmem:[%s2034_s1 + $0x288] sm:$0xff]  ;;  %v1063_v3 = vld [vmem:[%s2034_s1 + $0x3b8] sm:$0xff] }
  0x3e   :  { %356 = vmatprep.subr.mxu0 %v1028_v54  ;;  %474 = vmatprep.subr.mxu1 %v1069_v55  ;;  %v1021_v5 = vld [vmem:[%s2034_s1 + $0x280] sm:$0xff]  ;;  %v1062_v6 = vld [vmem:[%s2034_s1 + $0x3b0] sm:$0xff]  ;;  %v1020_v7 = vld [vmem:[%s2034_s1 + $0x278] sm:$0xff] }
  0x3f   :  { %357 = vmatpush1.msra.mxu0 %v1027_v56  ;;  %475 = vmatpush1.msra.mxu1 %v1068_v57  ;;  %v1061_v8 = vld [vmem:[%s2034_s1 + $0x3a8] sm:$0xff]  ;;  %v1019_v9 = vld [vmem:[%s2034_s1 + $0x270] sm:$0xff]  ;;  %v1060_v10 = vld [vmem:[%s2034_s1 + $0x3a0] sm:$0xff] }
  0x40   :  { %358 = vmatprep.subr.mxu0 %v1026_v58  ;;  %476 = vmatprep.subr.mxu1 %v1067_v59  ;;  %v1018_v12 = vld [vmem:[%s2034_s1 + $0x268] sm:$0xff]  ;;  %v1059_v13 = vld [vmem:[%s2034_s1 + $0x398] sm:$0xff]  ;;  %v1017_v14 = vld [vmem:[%s2034_s1 + $0x260] sm:$0xff]  ;;  %v529_v58 = vlaneseq }
  0x41   :  { %359 = vmatpush1.msra.mxu0 %v1025_v60  ;;  %477 = vmatpush1.msra.mxu1 %v1066_v61  ;;  %v1058_v15 = vld [vmem:[%s2034_s1 + $0x390] sm:$0xff]  ;;  %v1054_v16 = vld [vmem:[%s2034_s1 + $0x388] sm:$0x7]  ;;  %v1095_v17 = vld [vmem:[%s2034_s1 + $0x4b8] sm:$0x7] }
  0x42   :  { %360 = vmatprep.subr.mxu0 %v1024_v62  ;;  %478 = vmatprep.subr.mxu1 %v1065_v63  ;;  %v1053_v18 = vld [vmem:[%s2034_s1 + $0x380] sm:$0x7]  ;;  %v1094_v19 = vld [vmem:[%s2034_s1 + $0x4b0] sm:$0x7]  ;;  %v1052_v20 = vld [vmem:[%s2034_s1 + $0x378] sm:$0xff]  ;;  %v530_v61 = vshrl.u32 %v529_v58, 7 }
  0x43   :  { %361 = vmatpush1.msra.mxu0 %v1023_v0  ;;  %479 = vmatpush1.msra.mxu1 %v1064_v1  ;;  %v1093_v21 = vld [vmem:[%s2034_s1 + $0x4a8] sm:$0xff]  ;;  %v1051_v22 = vld [vmem:[%s2034_s1 + $0x370] sm:$0xff]  ;;  %v1092_v23 = vld [vmem:[%s2034_s1 + $0x4a0] sm:$0xff] }
  0x44   :  { %362 = vmatprep.subr.mxu0 %v1022_v2  ;;  %480 = vmatprep.subr.mxu1 %v1063_v3  ;;  %v1050_v24 = vld [vmem:[%s2034_s1 + $0x368] sm:$0xff]  ;;  %v1091_v25 = vld [vmem:[%s2034_s1 + $0x498] sm:$0xff]  ;;  %v1049_v26 = vld [vmem:[%s2034_s1 + $0x360] sm:$0xff]  ;;  %v531_v0 = vsub.s32 0, %v530_v61  ;;  %v535_v3 = vsub.s32 1, %v530_v61 }
  0x45   :  { %363 = vmatpush1.msra.mxu0 %v1021_v5  ;;  %481 = vmatpush1.msra.mxu1 %v1062_v6  ;;  %v1090_v27 = vld [vmem:[%s2034_s1 + $0x490] sm:$0xff]  ;;  %v558_v28 = vld [vmem:[%s2035_s2 + $0x78] sm:$0xff]  ;;  %v552_v33 = vld [vmem:[%s2035_s2 + $0x48] sm:$0xff] }
  0x46   :  { %364 = vmatprep.subr.mxu0 %v1020_v7  ;;  %482 = vmatprep.subr.mxu1 %v1061_v8  ;;  %v557_v30 = vld [vmem:[%s2035_s2 + $0x70] sm:$0xff]  ;;  %v554_v31 = vld [vmem:[%s2035_s2 + $0x58] sm:$0xff]  ;;  %v551_v34 = vld [vmem:[%s2035_s2 + $0x40] sm:$0xff] }
  0x47   :  { %365 = vmatpush1.msra.mxu0 %v1019_v9  ;;  %483 = vmatpush1.msra.mxu1 %v1060_v10  ;;  %v553_v32 = vld [vmem:[%s2035_s2 + $0x50] sm:$0xff]  ;;  %v550_v35 = vld [vmem:[%s2035_s2 + $0x38] sm:$0xff]  ;;  %v548_v37 = vld [vmem:[%s2035_s2 + $0x28] sm:$0xff] }
  0x48   :  { %366 = vmatprep.subr.mxu0 %v1018_v12  ;;  %484 = vmatprep.subr.mxu1 %v1059_v13  ;;  %v549_v36 = vld [vmem:[%s2035_s2 + $0x30] sm:$0xff]  ;;  %v547_v38 = vld [vmem:[%s2035_s2 + $0x20] sm:$0xff]  ;;  %v546_v39 = vld [vmem:[%s2035_s2 + $0x18] sm:$0xff] }
  0x49   :  { %367 = vmatpush1.msra.mxu0 %v1017_v14  ;;  %485 = vmatpush1.msra.mxu1 %v1058_v15  ;;  %v545_v40 = vld [vmem:[%s2035_s2 + $0x10] sm:$0xff]  ;;  %v544_v41 = vld [vmem:[%s2035_s2 + $0x8] sm:$0xff]  ;;  %v543_v42 = vld [vmem:[%s2035_s2] sm:$0xff] }
  0x4a   :  { %1055 = vmatprep.subr.msk.mxu0 %vm95_vm0, %v1054_v16  ;;  %1096 = vmatprep.subr.msk.mxu1 %vm95_vm0, %v1095_v17  ;;  %v560_v43 = vld [vmem:[%s2035_s2 + $0x88] sm:$0xff]  ;;  %v559_v44 = vld [vmem:[%s2035_s2 + $0x80] sm:$0xff]  ;;  %v658_v45 = vld [vmem:[%s2036_s3 + $0x78] sm:$0xff] }
  0x4b   :  { %1056 = vmatpush2.msk.msra.mxu0 %vm95_vm0, %v1053_v18  ;;  %1097 = vmatpush2.msk.msra.mxu1 %vm95_vm0, %v1094_v19  ;;  %v657_v46 = vld [vmem:[%s2036_s3 + $0x70] sm:$0xff]  ;;  %v656_v47 = vld [vmem:[%s2036_s3 + $0x68] sm:$0xff]  ;;  %v655_v48 = vld [vmem:[%s2036_s3 + $0x60] sm:$0xff] }
  0x4c   :  { %396 = vmatprep.subr.mxu0 %v1052_v20  ;;  %514 = vmatprep.subr.mxu1 %v1093_v21  ;;  %v654_v49 = vld [vmem:[%s2036_s3 + $0x58] sm:$0xff]  ;;  %v653_v50 = vld [vmem:[%s2036_s3 + $0x50] sm:$0xff]  ;;  %v652_v51 = vld [vmem:[%s2036_s3 + $0x48] sm:$0xff] }
  0x4d   :  { %397 = vmatpush2.msra.mxu0 %v1051_v22  ;;  %515 = vmatpush2.msra.mxu1 %v1092_v23  ;;  %v651_v52 = vld [vmem:[%s2036_s3 + $0x40] sm:$0xff]  ;;  %v650_v53 = vld [vmem:[%s2036_s3 + $0x38] sm:$0xff]  ;;  %v649_v54 = vld [vmem:[%s2036_s3 + $0x30] sm:$0xff] }
  0x4e   :  { %398 = vmatprep.subr.mxu0 %v1050_v24  ;;  %516 = vmatprep.subr.mxu1 %v1091_v25  ;;  %v648_v55 = vld [vmem:[%s2036_s3 + $0x28] sm:$0xff]  ;;  %v647_v56 = vld [vmem:[%s2036_s3 + $0x20] sm:$0xff]  ;;  %v646_v57 = vld [vmem:[%s2036_s3 + $0x18] sm:$0xff] }
  0x4f   :  { %399 = vmatpush2.msra.mxu0 %v1049_v26  ;;  %1057 = vmatprep.mubr.msk.f32.mxu0 %vm92_vm1, %v1563_v11  ;;  %v527_v2 = vld [vmem:[%s2039_s6] sm:$0x3]  ;;  %v645_v21 = vld [vmem:[%s2036_s3 + $0x10] sm:$0xff]  ;;  %v644_v22 = vld [vmem:[%s2036_s3 + $0x8] sm:$0xff] }
  0x50   :  { %517 = vmatpush2.msra.mxu1 %v1090_v27  ;;  %1098 = vmatprep.mubr.msk.f32.mxu1 %vm92_vm1, %v1563_v11  ;;  %v555_v11 = vld [vmem:[%s2035_s2 + $0x60] sm:$0xff]  ;;  %v532_v9 = vrot.slane %v527_v2, %v531_v0  ;;  %v536_v14 = vrot.slane %v527_v2, %v535_v3 }
  0x51   :  { %401 = vmatmul.mubr.f32.vlgmr.msra.gmra.mxu0 %v1537_v4  ;;  %519 = vmatmul.mubr.f32.vlgmr.msra.gmra.mxu1 %v1537_v4  ;;  %v556_v4 = vld [vmem:[%s2035_s2 + $0x68] sm:$0xff]  ;;  %v643_v23 = vld [vmem:[%s2036_s3] sm:$0xff] }
  0x52   :  { %572 = vmatprep.subr.mxu0 %v1256_v29  ;;  %1137 = vmatprep.subr.mxu1 %v1256_v29  ;;  %v1099_v24 = vld [vmem:[%s2040_s7] ss:$0 sm:$0xff] }
  0x53   :  { %573 = vmatpush1.msra.mxu0 %v558_v28  ;;  %1138 = vmatpush3.msra.mxu1 %v658_v45  ;;  %v1102_v45 = vld [vmem:[%s2042_s9] ss:$0 sm:$0xff] }
  0x54   :  { %574 = vmatprep.subr.mxu0 %v1256_v29  ;;  %1139 = vmatprep.subr.mxu1 %v1256_v29 }
  0x55   :  { %575 = vmatpush1.msra.mxu0 %v557_v30  ;;  %1140 = vmatpush3.msra.mxu1 %v657_v46  ;;  %v744_v30 = vld [vmem:[%s2037_s4 + $0x38] sm:$0xff] }
  0x56   :  { %576 = vmatprep.subr.mxu0 %v1256_v29  ;;  %1141 = vmatprep.subr.mxu1 %v1256_v29 }
  0x57   :  { %577 = vmatpush1.msra.mxu0 %v556_v4  ;;  %1142 = vmatpush3.msra.mxu1 %v656_v47  ;;  %v743_v4 = vld [vmem:[%s2037_s4 + $0x30] sm:$0xff] }
  0x58   :  { %578 = vmatprep.subr.mxu0 %v1256_v29  ;;  %1143 = vmatprep.subr.mxu1 %v1256_v29 }
  0x59   :  { %579 = vmatpush1.msra.mxu0 %v555_v11  ;;  %1144 = vmatpush3.msra.mxu1 %v655_v48  ;;  %v742_v11 = vld [vmem:[%s2037_s4 + $0x28] sm:$0xff] }
  0x5a   :  { %580 = vmatprep.subr.mxu0 %v1256_v29  ;;  %1145 = vmatprep.subr.mxu1 %v1256_v29 }
  0x5b   :  { %581 = vmatpush1.msra.mxu0 %v554_v31  ;;  %1146 = vmatpush3.msra.mxu1 %v654_v49  ;;  %v741_v31 = vld [vmem:[%s2037_s4 + $0x20] sm:$0xff] }
  0x5c   :  { %582 = vmatprep.subr.mxu0 %v1256_v29  ;;  %1147 = vmatprep.subr.mxu1 %v1256_v29 }
  0x5d   :  { %583 = vmatpush1.msra.mxu0 %v553_v32  ;;  %1148 = vmatpush3.msra.mxu1 %v653_v50  ;;  %v740_v32 = vld [vmem:[%s2037_s4 + $0x18] sm:$0xff]  ;;  %v1104_v50 = vld [vmem:[%s2043_s10] ss:$0 sm:$0xff] }
  0x5e   :  { %584 = vmatprep.subr.mxu0 %v1256_v29  ;;  %1149 = vmatprep.subr.mxu1 %v1256_v29 }
  0x5f   :  { %585 = vmatpush1.msra.mxu0 %v552_v33  ;;  %1150 = vmatpush3.msra.mxu1 %v652_v51  ;;  %v739_v33 = vld [vmem:[%s2037_s4 + $0x10] sm:$0xff] }
  0x60   :  { %586 = vmatprep.subr.mxu0 %v1256_v29  ;;  %1151 = vmatprep.subr.mxu1 %v1256_v29 }
  0x61   :  { %587 = vmatpush1.msra.mxu0 %v551_v34  ;;  %1152 = vmatpush3.msra.mxu1 %v651_v52  ;;  %v738_v34 = vld [vmem:[%s2037_s4 + $0x8] sm:$0xff] }
  0x62   :  { %588 = vmatprep.subr.mxu0 %v1256_v29  ;;  %1153 = vmatprep.subr.mxu1 %v1256_v29 }
  0x63   :  { %589 = vmatpush1.msra.mxu0 %v550_v35  ;;  %1154 = vmatpush3.msra.mxu1 %v650_v53  ;;  %v737_v35 = vld [vmem:[%s2037_s4] sm:$0xff] }
  0x64   :  { %590 = vmatprep.subr.mxu0 %v1256_v29  ;;  %1155 = vmatprep.subr.mxu1 %v1256_v29 }
  0x65   :  { %591 = vmatpush1.msra.mxu0 %v549_v36  ;;  %1156 = vmatpush3.msra.mxu1 %v649_v54  ;;  %v830_v36 = vld [vmem:[%s2038_s5 + $0x18] sm:$0xff]  ;;  %v930_v54 = vand.u32 127, %v529_v58 }
  0x66   :  { %592 = vmatprep.subr.mxu0 %v1256_v29  ;;  %1157 = vmatprep.subr.mxu1 %v1256_v29 }
  0x67   :  { %593 = vmatpush1.msra.mxu0 %v548_v37  ;;  %1158 = vmatpush3.msra.mxu1 %v648_v55  ;;  %v1101_v37 = vld [vmem:[%s2041_s8] ss:$0 sm:$0xff]  ;;  %v931_v55 = vcvt.s32.f32 %v930_v54 }
  0x68   :  { %594 = vmatprep.subr.mxu0 %v1256_v29  ;;  %1159 = vmatprep.subr.mxu1 %v1256_v29 }
  0x69   :  { %595 = vmatpush1.msra.mxu0 %v547_v38  ;;  %1160 = vmatpush3.msra.mxu1 %v647_v56 }
  0x6a   :  { %596 = vmatprep.subr.mxu0 %v1256_v29  ;;  %1161 = vmatprep.subr.mxu1 %v1256_v29 }
  0x6b   :  { %597 = vmatpush1.msra.mxu0 %v546_v39  ;;  %1162 = vmatpush3.msra.mxu1 %v646_v57 }
  0x6c   :  { %598 = vmatprep.subr.mxu0 %v1256_v29  ;;  %1163 = vmatprep.subr.mxu1 %v1256_v29 }
  0x6d   :  { %599 = vmatpush1.msra.mxu0 %v545_v40  ;;  %1164 = vmatpush3.msra.mxu1 %v645_v21 }
  0x6e   :  { %600 = vmatprep.subr.mxu0 %v1256_v29  ;;  %1165 = vmatprep.subr.mxu1 %v1256_v29 }
  0x6f   :  { %601 = vmatpush1.msra.mxu0 %v544_v41  ;;  %1166 = vmatpush3.msra.mxu1 %v644_v22 }
  0x70   :  { %602 = vmatprep.subr.mxu0 %v1256_v29  ;;  %1167 = vmatprep.subr.mxu1 %v1256_v29 }
  0x71   :  { %603 = vmatpush1.msra.mxu0 %v543_v42  ;;  %1168 = vmatpush3.msra.mxu1 %v643_v23  ;;  %v829_v42 = vld [vmem:[%s2038_s5 + $0x10] sm:$0xff] }
  0x72   :  { %632 = vmatprep.subr.mxu0 %v1256_v29  ;;  %1169 = vmatprep.mubr.msk.f32.mxu1 %vm1257_vm3, %v1256_v29 }
  0x73   :  { %633 = vmatpush2.msra.mxu0 %v560_v43  ;;  %1172 = vmatprep.subr.mxu1 %v1256_v29  ;;  %v828_v43 = vld [vmem:[%s2038_s5 + $0x8] sm:$0xff] }
  0x74   :  { %634 = vmatprep.subr.mxu0 %v1256_v29 }
  0x75   :  { %635 = vmatpush2.msra.mxu0 %v559_v44  ;;  %v827_v44 = vld [vmem:[%s2038_s5] sm:$0xff]  ;;  %s1258_s5 = smov [#allocation4]  }
  0x76   :  { %1191 = vmatprep.subr.mxu0 %v1256_v29  ;;  %s958_s9 = sshll.u32 %s1258_s5, 4  ;;  %s959_s9 = int_to_ptr.vmem [resolvable:$true] %s958_s9 }
  0x77   :  { %s1212_s10 = scalar_lea.vmem %s959_s9, 32  ;;  %p1217_p1 = scmp.lt.s32.totalorder %s959_s9, %s959_s9 }
  0x78   :  { %p1213_p0 = scmp.ne.s32.totalorder %s959_s9, %s1212_s10  ;;  %p1218_p2 = scmp.lt.s32.totalorder %s1212_s10, %s1212_s10 }
  0x7a   :  { %p1219_p3 = por %p1218_p2, %p1217_p1 }
  0x7c   :  { %p1220_p4 = pnand %p1219_p3, %p1213_p0 }
  0xe9   :  { %v168_v59 = vpop.f32.mrf.mxu0  ;;  %v284_v60 = vpop.f32.mrf.mxu1 }
  0xea   :  { %v289_v1 = vmax.f32 %v168_v59, %v284_v60 }
  0xeb   :  { %v170_v62 = vpop.f32.mrf.mxu0  ;;  %v286_v63 = vpop.f32.mrf.mxu1 }
  0xec   :  { %v290_v7 = vmax.f32 %v170_v62, %v286_v63 }
 0x111   :  { %v402_v5 = vpop.f32.mrf.mxu0  ;;  %v520_v6 = vpop.f32.mrf.mxu1 }
 0x112   :  { %v407_v8 = vmax.f32 %v289_v1, %v402_v5 }
 0x113   :  { %v404_v10 = vpop.f32.mrf.mxu0  ;;  %v522_v15 = vpop.f32.mrf.mxu1 }
 0x114   :  { %v525_v12 = vmax.f32 %v407_v8, %v520_v6  ;;  %v408_v13 = vmax.f32 %v290_v7, %v404_v10 }
 0x116   :  { %v526_v16 = vmax.f32 %v408_v13, %v522_v15  ;;  %v539_v17 = vadd.f32 %v532_v9, %v525_v12 }
 0x118   :  { %v540_v18 = vadd.f32 %v536_v14, %v526_v16  ;;  %v541_v20 = vmax.f32 %v539_v17, 0.0 }
 0x11a   :  { %v542_v19 = vmax.f32 %v540_v18, 0.0 }
 0x11c   :  { %1100 = vmatprep.mubr.msk.f32.mxu0 %vm568_vm2, %v542_v19 }
 0x11d   :  { %637 = vmatmul.mubr.f32.vlgmr.msra.gmra.mxu0 %v541_v20 }
 0x11e   :  { %1199 = vmatprep.mubr.msk.f32.mxu0 %vm1257_vm3, %v1256_v29  ;;  %1192 = vmatpush3.msra.mxu0 %v830_v36 }
 0x11f   :  { %1193 = vmatprep.subr.mxu0 %v1256_v29 }
 0x120   :  { %1194 = vmatpush3.msra.mxu0 %v829_v42 }
 0x121   :  { %1195 = vmatprep.subr.mxu0 %v1256_v29 }
 0x122   :  { %1196 = vmatpush3.msra.mxu0 %v828_v43 }
 0x123   :  { %1197 = vmatprep.subr.mxu0 %v1256_v29 }
 0x124   :  { %1198 = vmatpush3.msra.mxu0 %v827_v44 }
 0x1dd   :  { %v638_v25 = vpop.f32.mrf.mxu0 }
 0x1de   :  { %v639_v26 = vadd.f32 %v1099_v24, %v638_v25 }
 0x1df   :  { %v640_v27 = vpop.f32.mrf.mxu0 }
 0x1e0   :  { %v642_v28 = vmax.f32 %v639_v26, 0.0 }
 0x1e2   :  { %1170 = vmatmul.mubr.f32.vlgmr.msra.gmra.mxu1 %v642_v28 }
 0x1e3   :  { %1173 = vmatpush3.msra.mxu1 %v744_v30  ;;  %1188 = vmatprep.mubr.msk.f32.mxu1 %vm1257_vm3, %v1256_v29 }
 0x1e4   :  { %1174 = vmatprep.subr.mxu1 %v1256_v29 }
 0x1e5   :  { %1175 = vmatpush3.msra.mxu1 %v743_v4 }
 0x1e6   :  { %1176 = vmatprep.subr.mxu1 %v1256_v29 }
 0x1e7   :  { %1177 = vmatpush3.msra.mxu1 %v742_v11 }
 0x1e8   :  { %1178 = vmatprep.subr.mxu1 %v1256_v29 }
 0x1e9   :  { %1179 = vmatpush3.msra.mxu1 %v741_v31 }
 0x1ea   :  { %1180 = vmatprep.subr.mxu1 %v1256_v29 }
 0x1eb   :  { %1181 = vmatpush3.msra.mxu1 %v740_v32 }
 0x1ec   :  { %1182 = vmatprep.subr.mxu1 %v1256_v29 }
 0x1ed   :  { %1183 = vmatpush3.msra.mxu1 %v739_v33 }
 0x1ee   :  { %1184 = vmatprep.subr.mxu1 %v1256_v29 }
 0x1ef   :  { %1185 = vmatpush3.msra.mxu1 %v738_v34 }
 0x1f0   :  { %1186 = vmatprep.subr.mxu1 %v1256_v29 }
 0x1f1   :  { %1187 = vmatpush3.msra.mxu1 %v737_v35 }
 0x2a2   :  { %v732_v38 = vpop.f32.mrf.mxu1 }
 0x2a3   :  { %v733_v39 = vadd.f32 %v1101_v37, %v732_v38 }
 0x2a4   :  { %v1171_v40 = vpop.f32.mrf.mxu1 }
 0x2a5   :  { %v736_v41 = vmax.f32 %v733_v39, 0.0 }
 0x2a7   :  { %1189 = vmatmul.mubr.msk.f32.vlgmr.msra.gmra.mxu1 %vm752_vm4, %v736_v41 }
 0x367   :  { %v822_v46 = vpop.f32.mrf.mxu1 }
 0x368   :  { %v823_v47 = vadd.f32 %v1102_v45, %v822_v46 }
 0x369   :  { %v1190_v48 = vpop.f32.mrf.mxu1 }
 0x36a   :  { %v826_v49 = vmax.f32 %v823_v47, 0.0 }
 0x36c   :  { %1200 = vmatmul.mubr.msk.f32.vlgmr.msra.gmra.mxu0 %vm838_vm5, %v826_v49 }
 0x42c   :  { %v908_v29 = vpop.f32.mrf.mxu0 }
 0x42d   :  { %v909_v51 = vadd.f32 %v1104_v50, %v908_v29 }
 0x42e   :  { %v1201_v52 = vpop.f32.mrf.mxu0 }
 0x42f   :  { %v914_v53 = vsel %vm912_vm6, %v909_v51, -inf  ;;  %913 = vst.msk [vmem:[#allocation4] sm:$0x3] %vm912_vm6, %v909_v51 }
 0x430   :  { %915 = vmax.xlane.f32.xlu0 %v914_v53 }
 0x4b9   :  { %v916_v56 = vpop.xlane.xlu0 %915 }
 0x4ba   :  { %v917_v57 = vsub.f32 %v909_v51, %v916_v56  ;;  %vm932_vm7 = vcmp.ge.f32.partialorder %v909_v51, %v916_v56 }
 0x4bb   :  { %v933_v59 = vsel %vm932_vm7, %v931_v55, 4.0 }
 0x4bc   :  { %v918_v60 = vmul.f32 1.442695, %v917_v57  ;;  %v934_v61 = vsel %vm912_vm6, %v933_v59, inf }
 0x4bd   :  { %935 = vmin.xlane.f32.xlu1 %v934_v61 }
 0x4be   :  { %1208 = vpow2.f32 %v918_v60 }
 0x4cb   :  { %v1209_v62 = vpop.eup %1208 }
 0x4cc   :  { %v920_v63 = vsel %vm912_vm6, %v1209_v62, 0.0 }
 0x4cd   :  { %921 = vadd.xlane.f32.xlu0 %v920_v63 }
 0x4ce   :  { %1223 = shalt.err (!%p1220_p4)
}
 0x4cf   :  { %961 = dma.vmem_to_hbm [thread:$0]  %s959_s9, 32, %s2046_s13, [#allocation5]   ;;  %vm938_vm8 = vcmask 1024  }
 0x4d0   :  { %s1259_s0 = smov [#allocation2]  }
 0x4d1   :  { %s948_s16 = sshll.u32 %s1259_s0, 4  ;;  %s949_s16 = int_to_ptr.vmem [resolvable:$true] %s948_s16 }
 0x4d2   :  { %s1232_s13 = scalar_lea.vmem %s949_s16, 32  ;;  %p1237_p6 = scmp.lt.s32.totalorder %s949_s16, %s949_s16 }
 0x4d3   :  { %p1233_p5 = scmp.ne.s32.totalorder %s949_s16, %s1232_s13  ;;  %p1238_p7 = scmp.lt.s32.totalorder %s1232_s13, %s1232_s13 }
 0x4d5   :  { %p1239_p8 = por %p1238_p7, %p1237_p6 }
 0x4d7   :  { %p1240_p9 = pnand %p1239_p8, %p1233_p5 }
 0x546   :  { %v936_v58 = vpop.xlane.xlu1 %935 }
 0x547   :  { %v1202_v0 = vtrunc.f32 %v936_v58 }
 0x549   :  { %v1203_v1 = vcvt.f32.s32 %v1202_v0 }
 0x54b   :  { %939 = vst.msk [vmem:[%s2044_s11] sm:$0x3] %vm938_vm8, %v1203_v1 }
 0x556   :  { %v922_v2 = vpop.xlane.xlu0 %921 }
 0x557   :  { %1210 = vrcp.f32 %v922_v2 }
 0x564   :  { %v1211_v3 = vpop.eup %1210 }
 0x565   :  { %v924_v5 = vmul.f32 %v1211_v3, %v922_v2 }
 0x567   :  { %v925_v6 = vsub.f32 2.0, %v924_v5 }
 0x569   :  { %v926_v7 = vmul.f32 %v1211_v3, %v925_v6 }
 0x56b   :  { %v927_v8 = vmul.f32 %v1209_v62, %v926_v7 }
 0x56d   :  { %928 = vst.msk [vmem:[#allocation2] sm:$0x3] %vm912_vm6, %v927_v8 }
 0x56e   :  { %1243 = shalt.err (!%p1240_p9)
}
 0x56f   :  { %951 = dma.vmem_to_hbm [thread:$0]  %s949_s16, 32, %s2045_s12, [#allocation3]  }
 0x570   :  { %1252 = dma.done.wait [#allocation3], 32  }
 0x571   :  { %1253 = vsyncadd [#allocation3], 4294967264 }
 0x572   :  { %1254 = dma.done.wait [#allocation5], 32  }
 0x573   :  { %1255 = vsyncadd [#allocation5], 4294967264 }
 0x574   :  { %970 = vsyncpa [#allocation3], 1 }
 0x575   :  { %971 = vsyncpa [#allocation5], 1 }

</bundles_post_ra>
